<compile_context>
chip_gen: v7x
topology: tpu7x:2x2x1
jax: 0.10.0
libtpu: 0.0.40
codegen_flags: <defaults>
</compile_context>

<pallas_src>
import jax
import jax.numpy as jnp
from jax import lax
from jax.experimental import pallas as pl
from jax.experimental.pallas import tpu as pltpu


def _frozen_bn_kernel(x_ref, scale_ref, bias_ref, o_ref):
    # x_ref: (TM, TL) activation tile; scale/bias: (TM, 1) per-row columns,
    # broadcast along the lane axis. Explicit cast keeps bf16/fp8 inputs legal.
    x = x_ref[...]
    s = scale_ref[...]     # f32 (TM, 1)
    b = bias_ref[...]      # f32 (TM, 1)
    o_ref[...] = (x * s + b).astype(o_ref.dtype)


def _choose_tiles(m, hw, itemsize):
    """Pick (row_tile, lane_tile) for the (M=N*C, HW) slab."""
    # Lane tile: full row if small, else a large multiple of 128 lanes.
    max_lane = 4096
    tl = hw if hw <= max_lane else max_lane
    # Row tile: aim for ~4 MiB per x block (safe with double-buffered in+out
    # on v7x's 64 MiB VMEM, while large enough to amortize per-step overhead).
    target_bytes = 4 * 1024 * 1024
    # Sublane packing: f32 -> 8, bf16 -> 16, 8-bit -> 32 rows per vreg group.
    sublane_mult = 8 * max(1, 4 // max(1, itemsize))
    tm = max(sublane_mult, target_bytes // (tl * itemsize))
    if tm >= m:
        tm = m  # full extent is always a legal block dim
    else:
        tm = max(sublane_mult, (tm // sublane_mult) * sublane_mult)
    return int(tm), int(tl)


def frozen_batch_norm_2d(x, weight, bias, running_mean, running_var, *, eps=1e-05):
    """x: (N, C, H, W); per-channel buffers of shape (C,). Returns NCHW."""
    n, c, h, w_dim = x.shape
    hw = h * w_dim
    m = n * c

    # Free view: NCHW -> (N*C, H*W). No data movement.
    x2d = x.reshape(m, hw)

    # O(C) frozen-buffer math in the wrapper; fold 4 params into 2.
    w_f32 = weight.astype(jnp.float32)
    b_f32 = bias.astype(jnp.float32)
    rm_f32 = running_mean.astype(jnp.float32)
    rv_f32 = running_var.astype(jnp.float32)
    scale_c = w_f32 * lax.rsqrt(rv_f32 + jnp.float32(eps))        # (C,)
    bias_c = b_f32 - rm_f32 * scale_c                             # (C,)

    # Per-row (N*C, 1) columns so each row of x2d gets its channel's params.
    scale_col = jnp.tile(scale_c.reshape(1, c), (n, 1)).reshape(m, 1)
    bias_col = jnp.tile(bias_c.reshape(1, c), (n, 1)).reshape(m, 1)

    tm, tl = _choose_tiles(m, hw, x.dtype.itemsize)
    grid = (pl.cdiv(m, tm), pl.cdiv(hw, tl))

    out2d = pl.pallas_call(
        _frozen_bn_kernel,
        out_shape=jax.ShapeDtypeStruct((m, hw), x.dtype),
        grid_spec=pltpu.PrefetchScalarGridSpec(
            num_scalar_prefetch=0,
            grid=grid,
            in_specs=[
                pl.BlockSpec((tm, tl), lambda i, j: (i, j)),
                pl.BlockSpec((tm, 1), lambda i, j: (i, 0)),
                pl.BlockSpec((tm, 1), lambda i, j: (i, 0)),
            ],
            out_specs=pl.BlockSpec((tm, tl), lambda i, j: (i, j)),
        ),
        compiler_params=pltpu.CompilerParams(
            # Elementwise: every grid point independent -> both axes parallel
            # (lets v7x's two TensorCores both take work; no-op on v5e/v6e).
            dimension_semantics=("parallel", "parallel"),
            # Covers 2 buffers x (in + out) ~4 MiB blocks with headroom;
            # above v5e's 16 MiB default, well under v7x's 64 MiB physical.
            vmem_limit_bytes=40 * 1024 * 1024,
        ),
    )(x2d, scale_col, bias_col)

    # Free view back to NCHW.
    return out2d.reshape(n, c, h, w_dim)


def _reference(x, weight, bias, running_mean, running_var):
    eps = 1e-05
    w = weight.reshape(1, -1, 1, 1)
    b = bias.reshape(1, -1, 1, 1)
    rv = running_var.reshape(1, -1, 1, 1)
    rm = running_mean.reshape(1, -1, 1, 1)
    scale = w * lax.rsqrt(rv + eps)
    bias_ = b - rm * scale
    return x * scale + bias_


if __name__ == "__main__":
    key = jax.random.PRNGKey(0)
    n, c, h, w = 2, 4, 16, 16
    kx, kw, kb, km, kv = jax.random.split(key, 5)

    x = jax.random.normal(kx, (n, c, h, w), dtype=jnp.float32)
    # Deterministic "frozen" buffers (module __init__ gives ones/zeros; perturb
    # deterministically so the test is non-trivial but reproducible).
    weight = jnp.ones((c,), jnp.float32) + 0.1 * jax.random.normal(kw, (c,), jnp.float32)
    bias = jnp.zeros((c,), jnp.float32) + 0.1 * jax.random.normal(kb, (c,), jnp.float32)
    running_mean = 0.1 * jax.random.normal(km, (c,), jnp.float32)
    running_var = jnp.ones((c,), jnp.float32) + 0.1 * jnp.abs(
        jax.random.normal(kv, (c,), jnp.float32))

    out = frozen_batch_norm_2d(x, weight, bias, running_mean, running_var)
    out = jax.block_until_ready(out)

    ref = _reference(x, weight, bias, running_mean, running_var)
    assert out.shape == (n, c, h, w)
    assert out.dtype == x.dtype
    assert jnp.allclose(out, ref, atol=1e-5, rtol=1e-5)
    print("KERNEL_OK")
</pallas_src>

<mosaic_0001>
module attributes {stable_mosaic.version = 11 : i64} {
  func.func @_frozen_bn_kernel(%arg0: i32, %arg1: i32, %arg2: memref<8x256xf32, #tpu.memory_space<vmem>>, %arg3: memref<8x1xf32, #tpu.memory_space<vmem>>, %arg4: memref<8x1xf32, #tpu.memory_space<vmem>>, %arg5: memref<8x256xf32, #tpu.memory_space<vmem>>) attributes {dimension_semantics = [#tpu.dimension_semantics<parallel>, #tpu.dimension_semantics<parallel>], iteration_bounds = array<i64: 1, 1>, scalar_prefetch = 0 : i64, scratch_operands = 0 : i64, tpu.core_type = #tpu.core_type<tc>, window_params = [{transform_indices = @transform_0, window_bounds = array<i64: 8, 256>}, {transform_indices = @transform_1, window_bounds = array<i64: 8, 1>}, {transform_indices = @transform_2, window_bounds = array<i64: 8, 1>}, {transform_indices = @transform_3, window_bounds = array<i64: 8, 256>}]} {
    %c0 = arith.constant 0 : index
    %c0_0 = arith.constant 0 : index
    %0 = vector.load %arg2[%c0, %c0_0] : memref<8x256xf32, #tpu.memory_space<vmem>>, vector<8x256xf32>
    %c0_1 = arith.constant 0 : index
    %c0_2 = arith.constant 0 : index
    %1 = vector.load %arg3[%c0_1, %c0_2] : memref<8x1xf32, #tpu.memory_space<vmem>>, vector<8x1xf32>
    %c0_3 = arith.constant 0 : index
    %c0_4 = arith.constant 0 : index
    %2 = vector.load %arg4[%c0_3, %c0_4] : memref<8x1xf32, #tpu.memory_space<vmem>>, vector<8x1xf32>
    %3 = vector.broadcast %1 : vector<8x1xf32> to vector<8x256xf32>
    %4 = arith.mulf %0, %3 : vector<8x256xf32>
    %5 = vector.broadcast %2 : vector<8x1xf32> to vector<8x256xf32>
    %6 = arith.addf %4, %5 : vector<8x256xf32>
    %c0_5 = arith.constant 0 : index
    %c0_6 = arith.constant 0 : index
    %7 = vector.load %arg5[%c0_5, %c0_6] : memref<8x256xf32, #tpu.memory_space<vmem>>, vector<8x256xf32>
    tpu.vector_store %arg5[%c0_5, %c0_6], %6 {strides = array<i32>} : memref<8x256xf32, #tpu.memory_space<vmem>>, vector<8x256xf32>,
    return
  }
  func.func @transform_0(%arg0: i32, %arg1: i32) -> (i32, i32) {
    %c0_i32 = arith.constant 0 : i32
    return %arg0, %arg1 : i32, i32
  }
  func.func @transform_1(%arg0: i32, %arg1: i32) -> (i32, i32) {
    %c0_i32 = arith.constant 0 : i32
    %c0_i32_0 = arith.constant 0 : i32
    return %arg0, %c0_i32 : i32, i32
  }
  func.func @transform_2(%arg0: i32, %arg1: i32) -> (i32, i32) {
    %c0_i32 = arith.constant 0 : i32
    %c0_i32_0 = arith.constant 0 : i32
    return %arg0, %c0_i32 : i32, i32
  }
  func.func @transform_3(%arg0: i32, %arg1: i32) -> (i32, i32) {
    %c0_i32 = arith.constant 0 : i32
    return %arg0, %arg1 : i32, i32
  }
}

</mosaic_0001>

<bundles_post_ra>
// kernel: tpu_custom_call.1
= control target key start
LH: loop header
LB: loop body
LE: loop exit
PB: predicated region body
PF: predicated region fallthrough
CT: control target
= control target key end

     0   :  { %s122_s0 = inlined_call_operand.vmem [shape: f32[8,256], index: 0, kind: input, shape index: {}]   ;;  %s123_s1 = inlined_call_operand.vmem [shape: f32[8,1], index: 1, kind: input, shape index: {}]   ;;  %s124_s2 = inlined_call_operand.vmem [shape: f32[8,1], index: 2, kind: input, shape index: {}]   ;;  %s125_s3 = inlined_call_operand.hbm [shape: f32[8,256], index: 3, kind: output, shape index: {}]  }
   0x1   :  { %v17_v0 = vld [vmem:[%s123_s1] sm:$0xff] }
   0x2   :  { %8 = vsyncpa [#allocation3], 0  ;;  %v76_v1 = vmov 0   ;;  %v18_v2 = vld [vmem:[%s124_s2] sm:$0xff]  ;;  %v16_v5 = vld [vmem:[%s122_s0 + $0x8] sm:$0xff]  ;;  %s77_s20 = smov [#allocation2]  }
   0x3   :  { %51 = vset.pattern.permute.xlu0 %v76_v1  ;;  %v15_v4 = vld [vmem:[%s122_s0] sm:$0xff]  ;;  %s41_s1 = sshll.u32 %s77_s20, 4  ;;  %s42_s1 = int_to_ptr.vmem [resolvable:$true] %s41_s1 }
   0x4   :  { %21 = vperm.xlu0 %51, %v17_v0   ;;  %s52_s2 = scalar_lea.vmem %s42_s1, 256  ;;  %p57_p1 = scmp.lt.s32.totalorder %s42_s1, %s42_s1 }
   0x5   :  { %p53_p0 = scmp.ne.s32.totalorder %s42_s1, %s52_s2  ;;  %p58_p2 = scmp.lt.s32.totalorder %s52_s2, %s52_s2 }
   0x7   :  { %p59_p3 = por %p58_p2, %p57_p1 }
   0x8   :  { %28 = vperm.xlu0 %51, %v18_v2  }
   0x9   :  { %p60_p4 = pnand %p59_p3, %p53_p0 }
  0x83   :  { %v22_v3 = vpop.permute.xlu0 %21 }
  0x84   :  { %v24_v6 = vmul.f32 %v22_v3, %v15_v4  ;;  %v25_v7 = vmul.f32 %v22_v3, %v16_v5 }
  0x87   :  { %v29_v8 = vpop.permute.xlu0 %28 }
  0x88   :  { %v31_v9 = vadd.f32 %v29_v8, %v24_v6  ;;  %v32_v10 = vadd.f32 %v29_v8, %v25_v7 }
  0x8a   :  { %33 = vst [vmem:[#allocation2] sm:$0xff] %v31_v9  ;;  %34 = vst [vmem:[#allocation2 + $0x8] sm:$0xff] %v32_v10 }
  0x8b   :  { %63 = shalt.err (!%p60_p4)
}
  0x8c   :  { %s64_s0 = scalar_lea.hbm %s125_s3, 256 }
  0x8d   :  { %p65_p5 = scmp.ne.s32.totalorder %s125_s3, %s64_s0  ;;  %p68_p6 = scmp.lt.u32.totalorder %s64_s0, %s125_s3 }
  0x8f   :  { %p70_p7 = pnand %p68_p6, %p65_p5 }
  0x91   :  { %73 = shalt.err (!%p70_p7)
}
  0x92   :  { %44 = dma.vmem_to_hbm [thread:$0]  %s42_s1, 256, %s125_s3, [#allocation3]  }
  0x93   :  { %74 = dma.done.wait [#allocation3], 256  }
  0x94   :  { %75 = vsyncadd [#allocation3], 4294967040 }
  0x95   :  { %48 = vsyncpa [#allocation3], 1 }

</bundles_post_ra>
